<compile_context>
chip_gen: v7x
topology: tpu7x:2x2x1
jax: 0.10.0
libtpu: 0.0.40
codegen_flags: <defaults>
</compile_context>

<pallas_src>
import functools

import jax
import jax.numpy as jnp
from jax import lax
from jax.experimental import pallas as pl
from jax.experimental.pallas import tpu as pltpu

MIB = 1024 * 1024


def _round_up(x, m):
    return ((x + m - 1) // m) * m


def _pick_block(n, cap):
    t = min(n, cap)
    while n % t != 0:
        t -= 1
    return t


def _default_interleave_directions():
    # v7x has 2 TensorCores/chip -> keep the direction axis "parallel" (one direction per
    # core).  Single-TC v5e/v6e gain on the serial phase by interleaving the two
    # independent direction chains inside each grid step instead.
    try:
        kind = jax.devices()[0].device_kind.lower()
    except Exception:
        return True
    return not ("v7" in kind or "7x" in kind)


# ----------------------------------------------------------------------------
# VMEM budgeting (review: budget-aware tiles + explicit vmem_limit_bytes).
# ----------------------------------------------------------------------------
def _rec_vmem_bytes(Tb, Bp, Hp, csz, interleave):
    ndir = 2 if interleave else 1
    blocks = (ndir * Tb * Bp * 3 * Hp * csz      # gi slabs
              + ndir * Tb * Bp * Hp * csz        # per-step outputs
              + ndir * Hp * 3 * Hp * csz         # Whh
              + ndir * 8 * Hp * 4                # b_hh_n (sublane padded)
              + 8 * 128 * 4                      # lengths tile
              + 2 * Bp * Hp * 4)                 # resident final-hidden carry
    return 2 * blocks                            # default double-buffering


def _attn_vmem_bytes(Ta, Bp, Hp, C, csz):
    Cp = _round_up(C, 128)
    blocks = (2 * Ta * Bp * Hp * csz             # rf + rb blocks
              + 2 * Bp * Hp * 4                  # final hidden
              + 2 * Hp * Cp * csz                # classifier weights (lane padded)
              + 8 * Cp * 4                       # classifier bias
              + Bp * Cp * 4)                     # output
    scratch = 2 * 8 * 128 * 4 + 2 * Bp * Hp * 4
    return 2 * blocks + scratch


def _vmem_limit_bytes(estimate):
    # estimate + headroom, at least 32 MiB (raises v5e's 16 MiB scoped default), and kept
    # well under v7x's 64 MiB physical VMEM per TensorCore.
    return int(min(max(estimate * 5 // 4 + 2 * MIB, 32 * MIB), 56 * MIB))


def _choose_rec_block(T, Bp, Hp, csz, interleave, budget, cap):
    cap = max(8, cap - cap % 8)
    tb = cap
    while tb > 8 and _rec_vmem_bytes(tb, Bp, Hp, csz, interleave) > budget:
        tb -= 8
    n_tb = pl.cdiv(T, tb)
    tb = _round_up(pl.cdiv(T, n_tb), 8)          # minimal T padding for this block count
    return tb, n_tb * tb                         # (Tb, Tp)


def _choose_attn_block(Tp, Tb, Bp, Hp, C, csz, budget, cap):
    cap = max(8, cap - cap % 8)
    ta = min(cap, Tp)
    while ta > 8 and _attn_vmem_bytes(ta, Bp, Hp, C, csz) > budget:
        ta -= 8
    ta = max(ta, Tb)
    return _pick_block(Tp, ta)                   # must divide Tp (>= Tb by construction)


# ----------------------------------------------------------------------------
# 1) Hoisted input projection: gi = x2 @ [Wih_f|Wih_b] + (b_ih + b_hh[r,z]) folded bias.
# ----------------------------------------------------------------------------
def _proj_kernel(x_ref, w_ref, b_ref, o_ref):
    acc = jnp.dot(x_ref[...], w_ref[...],
                  preferred_element_type=jnp.float32) + b_ref[...]
    o_ref[...] = acc.astype(o_ref.dtype)         # gi stored in compute dtype (bf16 default)


def _input_projection(x2, w, b, out_dtype):
    M, K = x2.shape
    N = w.shape[1]
    tm = 8 * _pick_block(M // 8, 32)             # M = Tp*Bp (multiple of 8)
    tn = 128 * _pick_block(N // 128, 12)         # N = 6*Hp (multiple of 128)
    return pl.pallas_call(
        _proj_kernel,
        out_shape=jax.ShapeDtypeStruct((M, N), out_dtype),
        grid=(M // tm, N // tn),
        in_specs=[
            pl.BlockSpec((tm, K), lambda i, j: (i, 0)),
            pl.BlockSpec((K, tn), lambda i, j: (0, j)),
            pl.BlockSpec((1, tn), lambda i, j: (0, j)),
        ],
        out_specs=pl.BlockSpec((tm, tn), lambda i, j: (i, j)),
        compiler_params=pltpu.CompilerParams(
            dimension_semantics=("parallel", "parallel")),
    )(x2, w, b)


# ----------------------------------------------------------------------------
# Shared GRU cell (PyTorch semantics; b_ih + b_hh[r,z] already folded into gi).
# ----------------------------------------------------------------------------
def _gru_cell(gi, h, whh, bhhn, Hp):
    gh = jnp.dot(h.astype(whh.dtype), whh, preferred_element_type=jnp.float32)
    r = jax.nn.sigmoid(gi[:, 0:Hp] + gh[:, 0:Hp])
    z = jax.nn.sigmoid(gi[:, Hp:2 * Hp] + gh[:, Hp:2 * Hp])
    n = jnp.tanh(gi[:, 2 * Hp:3 * Hp] + r * (gh[:, 2 * Hp:3 * Hp] + bhhn))
    return (1.0 - z) * n + z * h


# ----------------------------------------------------------------------------
# 2a) Recurrent kernel, direction-parallel layout: grid = (direction, time_block).
#     Best on v7x (megacore: one direction per TensorCore).
# ----------------------------------------------------------------------------
def _rec_kernel_dirpar(len_ref, gi_ref, whh_ref, bhhn_ref, out_ref, hfin_ref,
                       *, Tb, Hp, unroll):
    d = pl.program_id(0)                         # 0 = forward, 1 = backward
    tb = pl.program_id(1)
    n_tb = pl.num_programs(1)

    @pl.when(tb == 0)
    def _():
        hfin_ref[...] = jnp.zeros_like(hfin_ref)

    whh = whh_ref[...]                           # (Hp, 3Hp) compute dtype
    lens = len_ref[...]                          # (Bp, 1) int32
    bhhn = jnp.broadcast_to(bhhn_ref[...], (lens.shape[0], Hp))   # hoisted broadcast
    base = (tb + d * (n_tb - 1 - 2 * tb)) * Tb   # natural-order time-block origin

    def step(tt, h):
        row = tt + d * (Tb - 1 - 2 * tt)         # natural-order row within the block
        t = base + row
        gi = gi_ref[row].astype(jnp.float32)     # (Bp, 3Hp)
        h_new = _gru_cell(gi, h, whh, bhhn, Hp)
        mask = lens > t
        h_upd = jnp.where(mask, h_new, h)        # freeze past each sequence length
        out_ref[row] = jnp.where(mask, h_upd, 0.0).astype(out_ref.dtype)
        return h_upd

    hfin_ref[...] = lax.fori_loop(0, Tb, step, hfin_ref[...], unroll=unroll)


def _bigru_recurrent_dirpar(lens, gi, whh_all, bhhn_all, Tp, Bp, Hp, Tb,
                            store_dtype, vmem_limit):
    n_tb = Tp // Tb
    kernel = functools.partial(_rec_kernel_dirpar, Tb=Tb, Hp=Hp,
                               unroll=min(Tb, 8))

    def tmap(d, tb):                             # natural-order time-block index
        return tb + d * (n_tb - 1 - 2 * tb)

    r_all, hfin = pl.pallas_call(
        kernel,
        out_shape=(jax.ShapeDtypeStruct((2, Tp, Bp, Hp), store_dtype),
                   jax.ShapeDtypeStruct((2, Bp, Hp), jnp.float32)),
        grid=(2, n_tb),
        in_specs=[
            pl.BlockSpec((Bp, 1), lambda d, tb: (0, 0)),
            pl.BlockSpec((Tb, Bp, 3 * Hp), lambda d, tb: (tmap(d, tb), 0, d)),
            pl.BlockSpec((None, Hp, 3 * Hp), lambda d, tb: (d, 0, 0)),
            pl.BlockSpec((None, 1, Hp), lambda d, tb: (d, 0, 0)),
        ],
        out_specs=(
            pl.BlockSpec((None, Tb, Bp, Hp), lambda d, tb: (d, tmap(d, tb), 0, 0)),
            pl.BlockSpec((None, Bp, Hp), lambda d, tb: (d, 0, 0)),   # resident carry
        ),
        compiler_params=pltpu.CompilerParams(
            dimension_semantics=("parallel", "arbitrary"),
            vmem_limit_bytes=vmem_limit),
    )(lens, gi, whh_all, bhhn_all)
    return r_all, hfin


# ----------------------------------------------------------------------------
# 2b) Recurrent kernel, direction-interleaved layout: grid = (time_block,).
#     Best on single-TensorCore v5e/v6e (two independent chains hide MXU latency).
# ----------------------------------------------------------------------------
def _rec_kernel_inter(len_ref, gif_ref, gib_ref, whh_ref, bhhn_ref,
                      outf_ref, outb_ref, hfin_ref, *, Tb, Hp, unroll):
    tb = pl.program_id(0)
    n_tb = pl.num_programs(0)

    @pl.when(tb == 0)
    def _():
        hfin_ref[...] = jnp.zeros_like(hfin_ref)

    whh_f = whh_ref[0]                           # (Hp, 3Hp)
    whh_b = whh_ref[1]
    lens = len_ref[...]                          # (Bp, 1)
    Bp = lens.shape[0]
    bn_f = jnp.broadcast_to(bhhn_ref[0], (Bp, Hp))
    bn_b = jnp.broadcast_to(bhhn_ref[1], (Bp, Hp))
    base_f = tb * Tb
    base_b = (n_tb - 1 - tb) * Tb

    def step(tt, carry):
        h_f, h_b = carry
        # forward chain (ascending time within the block)
        t_f = base_f + tt
        hn_f = _gru_cell(gif_ref[tt].astype(jnp.float32), h_f, whh_f, bn_f, Hp)
        m_f = lens > t_f
        h_f = jnp.where(m_f, hn_f, h_f)
        outf_ref[tt] = jnp.where(m_f, h_f, 0.0).astype(outf_ref.dtype)
        # backward chain (descending time) -- independent of the forward chain, so the
        # two MXU/EUP dependency chains interleave on single-TensorCore chips.
        row_b = Tb - 1 - tt
        t_b = base_b + row_b
        hn_b = _gru_cell(gib_ref[row_b].astype(jnp.float32), h_b, whh_b, bn_b, Hp)
        m_b = lens > t_b
        h_b = jnp.where(m_b, hn_b, h_b)
        outb_ref[row_b] = jnp.where(m_b, h_b, 0.0).astype(outb_ref.dtype)
        return (h_f, h_b)

    h_f, h_b = lax.fori_loop(0, Tb, step, (hfin_ref[0], hfin_ref[1]), unroll=unroll)
    hfin_ref[0] = h_f
    hfin_ref[1] = h_b


def _bigru_recurrent_inter(lens, gi, whh_all, bhhn_all, Tp, Bp, Hp, Tb,
                           store_dtype, vmem_limit):
    n_tb = Tp // Tb
    kernel = functools.partial(_rec_kernel_inter, Tb=Tb, Hp=Hp,
                               unroll=min(Tb, 4))
    r_f, r_b, hfin = pl.pallas_call(
        kernel,
        out_shape=(jax.ShapeDtypeStruct((Tp, Bp, Hp), store_dtype),
                   jax.ShapeDtypeStruct((Tp, Bp, Hp), store_dtype),
                   jax.ShapeDtypeStruct((2, Bp, Hp), jnp.float32)),
        grid=(n_tb,),
        in_specs=[
            pl.BlockSpec((Bp, 1), lambda tb: (0, 0)),
            pl.BlockSpec((Tb, Bp, 3 * Hp), lambda tb: (tb, 0, 0)),              # fwd gi
            pl.BlockSpec((Tb, Bp, 3 * Hp), lambda tb: (n_tb - 1 - tb, 0, 1)),   # bwd gi
            pl.BlockSpec((2, Hp, 3 * Hp), lambda tb: (0, 0, 0)),
            pl.BlockSpec((2, 1, Hp), lambda tb: (0, 0, 0)),
        ],
        out_specs=(
            pl.BlockSpec((Tb, Bp, Hp), lambda tb: (tb, 0, 0)),
            pl.BlockSpec((Tb, Bp, Hp), lambda tb: (n_tb - 1 - tb, 0, 0)),
            pl.BlockSpec((2, Bp, Hp), lambda tb: (0, 0, 0)),                    # carries
        ),
        compiler_params=pltpu.CompilerParams(
            dimension_semantics=("arbitrary",),
            vmem_limit_bytes=vmem_limit),
    )(lens, gi, gi, whh_all, bhhn_all)
    return r_f, r_b, hfin


# ----------------------------------------------------------------------------
# 3) Attention (online softmax over T blocks) + Linear classifier + log_softmax.
#    Padded timesteps (t >= T_true) are masked to -inf so the softmax denominator matches
#    the reference (which runs over exactly T, including zero-score padded batch rows).
# ----------------------------------------------------------------------------
def _attn_cls_kernel(rf_ref, rb_ref, hid_ref, wc_ref, bc_ref, out_ref,
                     m_sc, l_sc, cf_sc, cb_sc, *, t_true, t_total, use_approx):
    tb = pl.program_id(0)

    @pl.when(tb == 0)
    def _():
        m_sc[...] = jnp.full_like(m_sc, -jnp.inf)
        l_sc[...] = jnp.zeros_like(l_sc)
        cf_sc[...] = jnp.zeros_like(cf_sc)
        cb_sc[...] = jnp.zeros_like(cb_sc)

    rf = rf_ref[...].astype(jnp.float32)         # (Ta, Bp, Hp)
    rb = rb_ref[...].astype(jnp.float32)
    hf = hid_ref[0]                              # (Bp, Hp) f32
    hb = hid_ref[1]

    # scores: s[t, b] = <r[t,b,:], hidden[b,:]>  (the 2H concat is never formed)
    # TODO(synk): route this contraction and the ctx updates through a batched MXU
    # dot_general at large Bp*Hp once the bf16 r stream stops being the binding resource.
    s = (jnp.sum(rf * hf[None, :, :], axis=-1)
         + jnp.sum(rb * hb[None, :, :], axis=-1))                     # (Ta, Bp)
    if t_total > t_true:                          # mask the padded timesteps
        t_idx = tb * s.shape[0] + lax.broadcasted_iota(jnp.int32, s.shape, 0)
        s = jnp.where(t_idx < t_true, s, -jnp.inf)

    m_prev = m_sc[...]                                                # (1, Bp)
    m_new = jnp.maximum(m_prev, jnp.max(s, axis=0, keepdims=True))
    alpha = jnp.exp(m_prev - m_new)
    p = jnp.exp(s - m_new)                                            # (Ta, Bp)
    l_sc[...] = alpha * l_sc[...] + jnp.sum(p, axis=0, keepdims=True)

    alpha_c = jnp.transpose(alpha)                                    # (Bp, 1)
    cf_sc[...] = alpha_c * cf_sc[...] + jnp.sum(rf * p[:, :, None], axis=0)
    cb_sc[...] = alpha_c * cb_sc[...] + jnp.sum(rb * p[:, :, None], axis=0)
    m_sc[...] = m_new

    @pl.when(tb == pl.num_programs(0) - 1)
    def _():
        if use_approx:
            inv_l = pl.reciprocal(l_sc[...], approx=True)             # EUP slot
        else:
            inv_l = 1.0 / l_sc[...]
        inv_c = jnp.transpose(inv_l)                                  # (Bp, 1)
        cdt = wc_ref.dtype
        cf = (cf_sc[...] * inv_c).astype(cdt)
        cb = (cb_sc[...] * inv_c).astype(cdt)
        logits = (jnp.dot(cf, wc_ref[0], preferred_element_type=jnp.float32)
                  + jnp.dot(cb, wc_ref[1], preferred_element_type=jnp.float32)
                  + bc_ref[...])                                      # (Bp, C)
        lm = jnp.max(logits, axis=-1, keepdims=True)
        lse = jnp.log(jnp.sum(jnp.exp(logits - lm), axis=-1, keepdims=True)) + lm
        out_ref[...] = logits - lse                                   # log_softmax


def _attn_classifier(rf_in, rb_in, rf_spec, rb_spec, hfin, wc_all, bc,
                     Tp, T, Bp, Hp, C, Ta, use_approx, vmem_limit):
    # TODO(synk): on v7x, split T across two accumulator sets on a "parallel" axis so the
    # second TensorCore is not idle during the attention phase.
    kernel = functools.partial(_attn_cls_kernel, t_true=T, t_total=Tp,
                               use_approx=use_approx)
    return pl.pallas_call(
        kernel,
        out_shape=jax.ShapeDtypeStruct((Bp, C), jnp.float32),
        grid=(Tp // Ta,),
        in_specs=[
            rf_spec,
            rb_spec,
            pl.BlockSpec((2, Bp, Hp), lambda tb: (0, 0, 0)),
            pl.BlockSpec((2, Hp, C), lambda tb: (0, 0, 0)),
            pl.BlockSpec((1, C), lambda tb: (0, 0)),
        ],
        out_specs=pl.BlockSpec((Bp, C), lambda tb: (0, 0)),
        scratch_shapes=[
            pltpu.VMEM((1, Bp), jnp.float32),    # running max
            pltpu.VMEM((1, Bp), jnp.float32),    # running sum
            pltpu.VMEM((Bp, Hp), jnp.float32),   # running ctx (forward half)
            pltpu.VMEM((Bp, Hp), jnp.float32),   # running ctx (backward half)
        ],
        compiler_params=pltpu.CompilerParams(
            dimension_semantics=("arbitrary",),
            vmem_limit_bytes=vmem_limit),
    )(rf_in, rb_in, hfin, wc_all, bc)


# ----------------------------------------------------------------------------
# Parameter packing: pad H -> Hp (multiple of 128) per gate, stack directions, fold b_ih
# and the r/z halves of b_hh into the hoisted projection bias, cast matmul weights.
# ----------------------------------------------------------------------------
def _prepare_params(p, H, Hp, C, compute_dtype):
    def pad_gates(w, rows_out):
        rows_in = w.shape[0]
        out = jnp.zeros((rows_out, 3 * Hp), jnp.float32)
        for g in range(3):
            out = out.at[:rows_in, g * Hp:g * Hp + H].set(w[:, g * H:(g + 1) * H])
        return out

    E = p["wih_f"].shape[0]
    wih_cat = jnp.concatenate(
        [pad_gates(p["wih_f"], E), pad_gates(p["wih_b"], E)], axis=1)      # (E, 6Hp)

    # PyTorch GRU: the r/z gates see b_ih + b_hh as a plain sum -> fold b_hh[r,z] into the
    # projection bias.  Only the n-gate b_hh stays in-kernel: n = tanh(gi_n + r*(gh_n+b_hn)).
    bih_f = p["bih_f"].at[:, :2 * H].add(p["bhh_f"][:, :2 * H])
    bih_b = p["bih_b"].at[:, :2 * H].add(p["bhh_b"][:, :2 * H])
    bih_cat = jnp.concatenate([pad_gates(bih_f, 1), pad_gates(bih_b, 1)], axis=1)

    whh_all = jnp.stack(
        [pad_gates(p["whh_f"], Hp), pad_gates(p["whh_b"], Hp)], axis=0)    # (2, Hp, 3Hp)

    def pad_n_bias(b):
        return jnp.zeros((1, Hp), jnp.float32).at[:, :H].set(b[:, 2 * H:3 * H])
    bhhn_all = jnp.stack([pad_n_bias(p["bhh_f"]), pad_n_bias(p["bhh_b"])], axis=0)

    wc = p["wc"]                                                           # (2H, C)
    wc_all = jnp.zeros((2, Hp, C), jnp.float32)
    wc_all = wc_all.at[0, :H, :].set(wc[:H])
    wc_all = wc_all.at[1, :H, :].set(wc[H:2 * H])

    return dict(
        wih_cat=wih_cat.astype(compute_dtype),
        bih_cat=bih_cat,                          # f32 (added in the f32 GEMM epilogue)
        whh_all=whh_all.astype(compute_dtype),
        bhhn_all=bhhn_all,                        # f32
        wc_all=wc_all.astype(compute_dtype),
        bc=p["bc"].astype(jnp.float32),
    )


# ----------------------------------------------------------------------------
# Full forward.
# ----------------------------------------------------------------------------
def bi_a_gru_forward(x, lengths, params, compute_dtype=jnp.bfloat16,
                     interleave_directions=None,
                     time_block_cap=64, attn_block_cap=512):
    if interleave_directions is None:
        interleave_directions = _default_interleave_directions()
    x = x.astype(jnp.float32)
    B, T, E = x.shape
    H = params["whh_f"].shape[0]
    C = params["wc"].shape[1]
    Hp = _round_up(H, 128)            # lane-dense gates / hidden
    Bp = _round_up(B, 8)              # sublane-dense batch
    csz = jnp.dtype(compute_dtype).itemsize
    use_approx = jnp.dtype(compute_dtype) != jnp.dtype(jnp.float32)

    # budget-derived time blocks + T padding (padded steps are masked everywhere)
    Tb, Tp = _choose_rec_block(T, Bp, Hp, csz, interleave_directions,
                               budget=40 * MIB, cap=time_block_cap)
    Ta = _choose_attn_block(Tp, Tb, Bp, Hp, C, csz,
                            budget=24 * MIB, cap=attn_block_cap)
    rec_limit = _vmem_limit_bytes(
        _rec_vmem_bytes(Tb, Bp, Hp, csz, interleave_directions))
    attn_limit = _vmem_limit_bytes(_attn_vmem_bytes(Ta, Bp, Hp, C, csz))

    prep = _prepare_params(params, H, Hp, C, compute_dtype)

    # batch/time padding: padded batch rows get length 0 -> hidden frozen at 0, outputs 0;
    # padded timesteps are frozen by the length mask and -inf-masked in the attention.
    xp = jnp.zeros((Bp, Tp, E), jnp.float32).at[:B, :T].set(x)
    lens = jnp.zeros((Bp, 1), jnp.int32).at[:B, 0].set(lengths.astype(jnp.int32))

    # time-major flatten, then one hoisted projection GEMM shared by both directions
    x2 = jnp.transpose(xp, (1, 0, 2)).reshape(Tp * Bp, E).astype(compute_dtype)
    gi = _input_projection(x2, prep["wih_cat"], prep["bih_cat"], compute_dtype)
    gi = gi.reshape(Tp, Bp, 6 * Hp)

    if interleave_directions:
        r_f, r_b, hfin = _bigru_recurrent_inter(
            lens, gi, prep["whh_all"], prep["bhhn_all"], Tp, Bp, Hp, Tb,
            compute_dtype, rec_limit)
        rf_in, rb_in = r_f, r_b
        rf_spec = pl.BlockSpec((Ta, Bp, Hp), lambda tb: (tb, 0, 0))
        rb_spec = pl.BlockSpec((Ta, Bp, Hp), lambda tb: (tb, 0, 0))
    else:
        r_all, hfin = _bigru_recurrent_dirpar(
            lens, gi, prep["whh_all"], prep["bhhn_all"], Tp, Bp, Hp, Tb,
            compute_dtype, rec_limit)
        rf_in = rb_in = r_all                     # same array, two direction views
        rf_spec = pl.BlockSpec((None, Ta, Bp, Hp), lambda tb: (0, tb, 0, 0))
        rb_spec = pl.BlockSpec((None, Ta, Bp, Hp), lambda tb: (1, tb, 0, 0))

    logp = _attn_classifier(rf_in, rb_in, rf_spec, rb_spec, hfin,
                            prep["wc_all"], prep["bc"],
                            Tp, T, Bp, Hp, C, Ta, use_approx, attn_limit)
    return logp[:B]


# ----------------------------------------------------------------------------
# Deterministic parameter init (shapes implied by nn.GRU(E,H,bidirectional=True) and
# nn.Linear(2H, C)); weights stored pre-transposed for right-multiplication.
# ----------------------------------------------------------------------------
def init_params(key, E, H, C):
    ks = jax.random.split(key, 10)
    bound = 1.0 / float(H) ** 0.5
    u = lambda kk, shape: jax.random.uniform(kk, shape, jnp.float32, -bound, bound)
    return dict(
        wih_f=u(ks[0], (E, 3 * H)), whh_f=u(ks[1], (H, 3 * H)),
        bih_f=u(ks[2], (1, 3 * H)), bhh_f=u(ks[3], (1, 3 * H)),
        wih_b=u(ks[4], (E, 3 * H)), whh_b=u(ks[5], (H, 3 * H)),
        bih_b=u(ks[6], (1, 3 * H)), bhh_b=u(ks[7], (1, 3 * H)),
        wc=u(ks[8], (2 * H, C)), bc=u(ks[9], (1, C)),
    )


# ----------------------------------------------------------------------------
# Pure-JAX reference (correctness check only).
# ----------------------------------------------------------------------------
def reference_forward(x, lengths, p):
    B, T, E = x.shape
    H = p["whh_f"].shape[0]

    def cell(xt, h, wih, whh, bih, bhh):
        gi = xt @ wih + bih
        gh = h @ whh + bhh
        r = jax.nn.sigmoid(gi[:, :H] + gh[:, :H])
        z = jax.nn.sigmoid(gi[:, H:2 * H] + gh[:, H:2 * H])
        n = jnp.tanh(gi[:, 2 * H:] + r * gh[:, 2 * H:])
        return (1.0 - z) * n + z * h

    def run(reverse, wih, whh, bih, bhh):
        h = jnp.zeros((B, H), jnp.float32)
        outs = [None] * T
        order = range(T - 1, -1, -1) if reverse else range(T)
        for t in order:
            mask = (lengths > t)[:, None]
            h = jnp.where(mask, cell(x[:, t], h, wih, whh, bih, bhh), h)
            outs[t] = jnp.where(mask, h, 0.0)
        return jnp.stack(outs, axis=1), h

    of, hf = run(False, p["wih_f"], p["whh_f"], p["bih_f"], p["bhh_f"])
    ob, hb = run(True, p["wih_b"], p["whh_b"], p["bih_b"], p["bhh_b"])
    r_out = jnp.concatenate([of, ob], axis=-1)
    hid = jnp.concatenate([hf, hb], axis=-1)
    scores = jnp.einsum("btd,bd->bt", r_out, hid)
    soft = jax.nn.softmax(scores, axis=1)
    ctx = jnp.einsum("btd,bt->bd", r_out, soft)
    logits = ctx @ p["wc"] + p["bc"]
    return jax.nn.log_softmax(logits, axis=-1)


if __name__ == "__main__":
    B, T, E, H, C = 2, 8, 16, 32, 3
    key = jax.random.PRNGKey(0)
    kx, kp = jax.random.split(key)
    x = jax.random.normal(kx, (B, T, E), jnp.float32)
    # pack_padded_sequence(enforce_sorted=True) expects descending lengths
    lengths = jnp.array([8, 5], dtype=jnp.int32)
    params = init_params(kp, E, H, C)
    ref = reference_forward(x, lengths, params)

    # f32 compute path, both recurrent layouts: matches the pure-JAX reference tightly.
    for inter in (False, True):
        out_f32 = jax.block_until_ready(
            bi_a_gru_forward(x, lengths, params, compute_dtype=jnp.float32,
                             interleave_directions=inter))
        assert out_f32.shape == (B, C)
        assert bool(jnp.all(jnp.isfinite(out_f32)))
        assert bool(jnp.allclose(out_f32, ref, atol=3e-3, rtol=3e-3)), (inter, out_f32, ref)

    # second shape: exercises T-padding (Tp > T), batch padding and multi-block
    # online-softmax with padded-timestep masking, in both layouts.
    Bb, Tb2 = 3, 10
    xb = jax.random.normal(jax.random.PRNGKey(1), (Bb, Tb2, E), jnp.float32)
    lengthsb = jnp.array([10, 7, 4], dtype=jnp.int32)
    refb = reference_forward(xb, lengthsb, params)
    for inter in (False, True):
        outb = jax.block_until_ready(
            bi_a_gru_forward(xb, lengthsb, params, compute_dtype=jnp.float32,
                             interleave_directions=inter,
                             time_block_cap=8, attn_block_cap=8))
        assert bool(jnp.all(jnp.isfinite(outb)))
        assert bool(jnp.allclose(outb, refb, atol=3e-3, rtol=3e-3)), (inter, outb, refb)

    # bf16-MXU compute path (default performance configuration; bf16 gi/r storage).
    # Note: spot-check tolerance at production T/H before relying on bf16 end-to-end.
    out_bf16 = jax.block_until_ready(bi_a_gru_forward(x, lengths, params))
    assert out_bf16.shape == (B, C)
    assert bool(jnp.all(jnp.isfinite(out_bf16)))
    assert bool(jnp.max(jnp.abs(out_bf16 - ref)) < 0.25)

    print("KERNEL_OK")
</pallas_src>

<mosaic_0001>
module attributes {stable_mosaic.version = 11 : i64} {
  func.func @_proj_kernel(%arg0: i32, %arg1: i32, %arg2: memref<64x16xf32, #tpu.memory_space<vmem>>, %arg3: memref<16x768xf32, #tpu.memory_space<vmem>>, %arg4: memref<1x768xf32, #tpu.memory_space<vmem>>, %arg5: memref<64x768xf32, #tpu.memory_space<vmem>>) attributes {dimension_semantics = [#tpu.dimension_semantics<parallel>, #tpu.dimension_semantics<parallel>], iteration_bounds = array<i64: 1, 1>, scalar_prefetch = 0 : i64, scratch_operands = 0 : i64, tpu.core_type = #tpu.core_type<tc>, window_params = [{transform_indices = @transform_0, window_bounds = array<i64: 64, 16>}, {transform_indices = @transform_1, window_bounds = array<i64: 16, 768>}, {transform_indices = @transform_2, window_bounds = array<i64: 1, 768>}, {transform_indices = @transform_3, window_bounds = array<i64: 64, 768>}]} {
    %c0 = arith.constant 0 : index
    %c0_0 = arith.constant 0 : index
    %0 = vector.load %arg2[%c0, %c0_0] : memref<64x16xf32, #tpu.memory_space<vmem>>, vector<64x16xf32>
    %c0_1 = arith.constant 0 : index
    %c0_2 = arith.constant 0 : index
    %1 = vector.load %arg3[%c0_1, %c0_2] : memref<16x768xf32, #tpu.memory_space<vmem>>, vector<16x768xf32>
    %cst = arith.constant dense<0.000000e+00> : vector<64x768xf32>
    %2 = tpu.matmul %0, %1, %cst {dimension_numbers = #tpu.dot_dimension_numbers<[1], [0], [0], [1], [0, 0, 1, 1], [], []>} : vector<64x16xf32>, vector<16x768xf32>, vector<64x768xf32> -> vector<64x768xf32>
    %c0_3 = arith.constant 0 : index
    %c0_4 = arith.constant 0 : index
    %3 = vector.load %arg4[%c0_3, %c0_4] : memref<1x768xf32, #tpu.memory_space<vmem>>, vector<1x768xf32>
    %4 = vector.broadcast %3 : vector<1x768xf32> to vector<64x768xf32>
    %5 = arith.addf %2, %4 : vector<64x768xf32>
    %c0_5 = arith.constant 0 : index
    %c0_6 = arith.constant 0 : index
    %6 = vector.load %arg5[%c0_5, %c0_6] : memref<64x768xf32, #tpu.memory_space<vmem>>, vector<64x768xf32>
    tpu.vector_store %arg5[%c0_5, %c0_6], %5 {strides = array<i32>} : memref<64x768xf32, #tpu.memory_space<vmem>>, vector<64x768xf32>,
    return
  }
  func.func @transform_0(%arg0: i32, %arg1: i32) -> (i32, i32) {
    %c0_i32 = arith.constant 0 : i32
    %c0_i32_0 = arith.constant 0 : i32
    return %arg0, %c0_i32 : i32, i32
  }
  func.func @transform_1(%arg0: i32, %arg1: i32) -> (i32, i32) {
    %c0_i32 = arith.constant 0 : i32
    %c0_i32_0 = arith.constant 0 : i32
    return %c0_i32, %arg1 : i32, i32
  }
  func.func @transform_2(%arg0: i32, %arg1: i32) -> (i32, i32) {
    %c0_i32 = arith.constant 0 : i32
    %c0_i32_0 = arith.constant 0 : i32
    return %c0_i32, %arg1 : i32, i32
  }
  func.func @transform_3(%arg0: i32, %arg1: i32) -> (i32, i32) {
    %c0_i32 = arith.constant 0 : i32
    return %arg0, %arg1 : i32, i32
  }
}

</mosaic_0001>

<bundles_post_ra>
// kernel: tpu_custom_call.1
= control target key start
LH: loop header
LB: loop body
LE: loop exit
PB: predicated region body
PF: predicated region fallthrough
CT: control target
= control target key end

     0   :  { %8 = vsyncpa [#allocation3], 0  ;;  %s771_s0 = inlined_call_operand.vmem [shape: f32[64,16], index: 0, kind: input, shape index: {}]   ;;  %s772_s1 = inlined_call_operand.hbm [shape: f32[16,768], index: 1, kind: input, shape index: {}]   ;;  %s773_s2 = inlined_call_operand.vmem [shape: f32[1,768], index: 2, kind: input, shape index: {}]   ;;  %s774_s3 = inlined_call_operand.hbm [shape: f32[64,768], index: 3, kind: output, shape index: {}]  }
   0x1   :  { %9 = vsyncpa [#allocation4], 0  ;;  %s601_s12 = smov [#allocation2]   ;;  %s553_s16 = scalar_lea.hbm %s772_s1, 1536 }
   0x2   :  { %s17_s13 = sshll.u32 %s601_s12, 4  ;;  %p554_p0 = scmp.ne.s32.totalorder %s772_s1, %s553_s16  ;;  %s18_s13 = int_to_ptr.vmem [resolvable:$true] %s17_s13 }
   0x3   :  { %p557_p1 = scmp.lt.u32.totalorder %s553_s16, %s772_s1 }
   0x5   :  { %p559_p2 = pnand %p557_p1, %p554_p0 }
   0x7   :  { %562 = shalt.err (!%p559_p2)
}
   0x8   :  { %s563_s21 = scalar_lea.vmem %s18_s13, 1536  ;;  %p568_p4 = scmp.lt.s32.totalorder %s18_s13, %s18_s13 }
   0x9   :  { %p564_p3 = scmp.ne.s32.totalorder %s18_s13, %s563_s21  ;;  %p569_p5 = scmp.lt.s32.totalorder %s563_s21, %s563_s21 }
   0xb   :  { %p570_p6 = por %p569_p5, %p568_p4 }
   0xd   :  { %p571_p7 = pnand %p570_p6, %p564_p3 }
   0xf   :  { %574 = shalt.err (!%p571_p7)
}
  0x10   :  { %s602_s22 = smov 768   ;;  %s603_s23 = smov 48  }
  0x11   :  { %23 = dma.hbm_to_vmem [thread:$0]  %s772_s1, 1536, %s18_s13, [#allocation3], %s602_s22, %s602_s22, %s603_s23  }
  0x12   :  { %597 = dma.done.wait [#allocation3], 1536  }
  0x13   :  { %598 = vsyncadd [#allocation3], 4294965760  ;;  %v604_v0 = vmov 0.0   ;;  %v38_v1 = vld [vmem:[#allocation2 + $0x8] sm:$0xff]  ;;  %v44_v2 = vld [vmem:[#allocation2 + $0x38] sm:$0xff]  ;;  %vm81_vm0 = vcmask 130048   ;;  %v51_v27 = vlaneseq }
  0x14   :  { %170 = vmatprep.mubr.f32.mxu0 %v604_v0  ;;  %194 = vmatprep.mubr.f32.mxu1 %v604_v0  ;;  %v37_v3 = vld [vmem:[#allocation2] sm:$0xff]  ;;  %v534_v4 = vpack.c.bf16 %v44_v2, %v38_v1  ;;  %v43_v5 = vld [vmem:[#allocation2 + $0x30] sm:$0xff]  ;;  %v40_v8 = vld [vmem:[#allocation2 + $0x18] sm:$0xff] }
  0x15   :  { %v536_v6 = vpack.c.bf16 %v43_v5, %v37_v3  ;;  %v29_v7 = vld [vmem:[%s771_s0] sm:$0xff]  ;;  %v46_v9 = vld [vmem:[#allocation2 + $0x48] sm:$0xff]  ;;  %v48_v12 = vld [vmem:[#allocation2 + $0x58] sm:$0xff]  ;;  %v52_v28 = vshrl.u32 %v51_v27, 7 }
  0x16   :  { %v42_v10 = vld [vmem:[#allocation2 + $0x28] sm:$0xff]  ;;  %535 = vmatprep.subr.bf16.mxu0 %v534_v4  ;;  %546 = vmatprep.subr.bf16.mxu1 %v534_v4  ;;  %v538_v11 = vpack.c.bf16 %v46_v9, %v40_v8  ;;  %v39_v13 = vld [vmem:[#allocation2 + $0x10] sm:$0xff]  ;;  %v45_v14 = vld [vmem:[#allocation2 + $0x40] sm:$0xff] }
  0x17   :  { %537 = vmatpush1.bf16.msra.mxu0 %v536_v6  ;;  %547 = vmatpush1.bf16.msra.mxu1 %v536_v6  ;;  %v33_v15 = vld [vmem:[%s771_s0 + $0x20] sm:$0xff]  ;;  %v542_v16 = vpack.c.bf16 %v48_v12, %v42_v10  ;;  %v540_v17 = vpack.c.bf16 %v45_v14, %v39_v13  ;;  %v47_v19 = vld [vmem:[#allocation2 + $0x50] sm:$0xff]  ;;  %v30_v21 = vld [vmem:[%s771_s0 + $0x8] sm:$0xff]  ;;  %v53_v29 = vsub.s32 0, %v52_v28  ;;  %v57_v31 = vsub.s32 1, %v52_v28 }
  0x18   :  { %v41_v18 = vld [vmem:[#allocation2 + $0x20] sm:$0xff]  ;;  %539 = vmatprep.subr.bf16.mxu1 %v538_v11  ;;  %v34_v22 = vld [vmem:[%s771_s0 + $0x28] sm:$0xff]  ;;  %v31_v23 = vld [vmem:[%s771_s0 + $0x10] sm:$0xff]  ;;  %v61_v56 = vsub.s32 2, %v52_v28  ;;  %v69_v57 = vsub.s32 4, %v52_v28  ;;  %v65_v60 = vsub.s32 3, %v52_v28 }
  0x19   :  { %v544_v20 = vpack.c.bf16 %v47_v19, %v41_v18  ;;  %543 = vmatprep.subr.bf16.mxu0 %v542_v16  ;;  %v35_v24 = vld [vmem:[%s771_s0 + $0x30] sm:$0xff]  ;;  %v32_v25 = vld [vmem:[%s771_s0 + $0x18] sm:$0xff]  ;;  %v49_v30 = vld [vmem:[%s773_s2] sm:$0x3f]  ;;  %v73_v61 = vsub.s32 5, %v52_v28  ;;  %s605_s2 = smov [#allocation5]  }
  0x1a   :  { %510 = vmatmul.mubr.msk.f32.vlgmr.msra.gmra.mrb[0].mxu0 %vm81_vm0, %v29_v7  ;;  %514 = vmatmul.mubr.msk.f32.vlgmr.msra.gmra.mrb[0].mxu1 %vm81_vm0, %v33_v15  ;;  %v36_v26 = vld [vmem:[%s771_s0 + $0x38] sm:$0xff]  ;;  %v54_v32 = vrot.slane %v49_v30, %v53_v29  ;;  %v58_v33 = vrot.slane %v49_v30, %v57_v31  ;;  %v716_v4 = vrot.slane %v49_v30, %v61_v56  ;;  %s498_s15 = sshll.u32 %s605_s2, 4  ;;  %s499_s15 = int_to_ptr.vmem [resolvable:$true] %s498_s15 }
  0x1b   :  { %541 = vmatpush1.bf16.msra.mxu1 %v540_v17  ;;  %545 = vmatpush1.bf16.msra.mxu0 %v544_v20  ;;  %v718_v5 = vrot.slane %v49_v30, %v69_v57  ;;  %v720_v8 = vrot.slane %v49_v30, %v65_v60  ;;  %v722_v9 = vrot.slane %v49_v30, %v73_v61  ;;  %s575_s16 = scalar_lea.vmem %s499_s15, 6144  ;;  %p580_p9 = scmp.lt.s32.totalorder %s499_s15, %s499_s15 }
  0x1c   :  { %176 = vmatprep.mubr.f32.mxu0 %v604_v0  ;;  %200 = vmatprep.mubr.f32.mxu1 %v604_v0  ;;  %p576_p8 = scmp.ne.s32.totalorder %s499_s15, %s575_s16  ;;  %p581_p10 = scmp.lt.s32.totalorder %s575_s16, %s575_s16 }
  0x1e   :  { %511 = vmatmul.mubr.msk.f32.gmra.mrb[2].mxu0 %vm81_vm0, %v30_v21  ;;  %515 = vmatmul.mubr.msk.f32.gmra.mrb[2].mxu1 %vm81_vm0, %v34_v22  ;;  %p582_p11 = por %p581_p10, %p580_p9 }
  0x1f   :  { %182 = vmatprep.mubr.f32.mxu0 %v604_v0  ;;  %206 = vmatprep.mubr.f32.mxu1 %v604_v0 }
  0x20   :  { %p583_p12 = pnand %p582_p11, %p576_p8 }
  0x22   :  { %512 = vmatmul.mubr.msk.f32.gmra.mrb[4].mxu0 %vm81_vm0, %v31_v23  ;;  %516 = vmatmul.mubr.msk.f32.gmra.mrb[4].mxu1 %vm81_vm0, %v35_v24 }
  0x23   :  { %188 = vmatprep.mubr.f32.mxu0 %v604_v0  ;;  %212 = vmatprep.mubr.f32.mxu1 %v604_v0 }
  0x26   :  { %513 = vmatmul.mubr.msk.f32.gmra.mrb[6].mxu0 %vm81_vm0, %v32_v25  ;;  %517 = vmatmul.mubr.msk.f32.gmra.mrb[6].mxu1 %vm81_vm0, %v36_v26 }
  0x27   :  { %283 = vmatprep.mubr.f32.mxu1 %v604_v0  ;;  %396 = vmatprep.mubr.f32.mxu0 %v604_v0 }
  0x2a   :  { %518 = vmatmul.mubr.msk.f32.vlgmr.msra.gmra.mrb[8].mxu1 %vm81_vm0, %v29_v7  ;;  %526 = vmatmul.mubr.msk.f32.vlgmr.msra.gmra.mrb[8].mxu0 %vm81_vm0, %v29_v7 }
  0x2b   :  { %289 = vmatprep.mubr.f32.mxu1 %v604_v0  ;;  %402 = vmatprep.mubr.f32.mxu0 %v604_v0 }
  0x2e   :  { %519 = vmatmul.mubr.msk.f32.gmra.mrb[10].mxu1 %vm81_vm0, %v30_v21  ;;  %527 = vmatmul.mubr.msk.f32.gmra.mrb[10].mxu0 %vm81_vm0, %v30_v21 }
  0x2f   :  { %295 = vmatprep.mubr.f32.mxu1 %v604_v0  ;;  %408 = vmatprep.mubr.f32.mxu0 %v604_v0 }
  0x32   :  { %520 = vmatmul.mubr.msk.f32.gmra.mrb[12].mxu1 %vm81_vm0, %v31_v23  ;;  %528 = vmatmul.mubr.msk.f32.gmra.mrb[12].mxu0 %vm81_vm0, %v31_v23 }
  0x33   :  { %301 = vmatprep.mubr.f32.mxu1 %v604_v0  ;;  %414 = vmatprep.mubr.f32.mxu0 %v604_v0 }
  0x36   :  { %521 = vmatmul.mubr.msk.f32.gmra.mrb[14].mxu1 %vm81_vm0, %v32_v25  ;;  %529 = vmatmul.mubr.msk.f32.gmra.mrb[14].mxu0 %vm81_vm0, %v32_v25 }
  0x37   :  { %307 = vmatprep.mubr.f32.mxu1 %v604_v0  ;;  %420 = vmatprep.mubr.f32.mxu0 %v604_v0 }
  0x3a   :  { %522 = vmatmul.mubr.msk.f32.gmra.mrb[16].mxu1 %vm81_vm0, %v33_v15  ;;  %530 = vmatmul.mubr.msk.f32.gmra.mrb[16].mxu0 %vm81_vm0, %v33_v15 }
  0x3b   :  { %313 = vmatprep.mubr.f32.mxu1 %v604_v0  ;;  %426 = vmatprep.mubr.f32.mxu0 %v604_v0 }
  0x3e   :  { %523 = vmatmul.mubr.msk.f32.gmra.mrb[18].mxu1 %vm81_vm0, %v34_v22  ;;  %531 = vmatmul.mubr.msk.f32.gmra.mrb[18].mxu0 %vm81_vm0, %v34_v22 }
  0x3f   :  { %319 = vmatprep.mubr.f32.mxu1 %v604_v0  ;;  %432 = vmatprep.mubr.f32.mxu0 %v604_v0 }
  0x42   :  { %524 = vmatmul.mubr.msk.f32.gmra.mrb[20].mxu1 %vm81_vm0, %v35_v24  ;;  %532 = vmatmul.mubr.msk.f32.gmra.mrb[20].mxu0 %vm81_vm0, %v35_v24 }
  0x43   :  { %325 = vmatprep.mubr.f32.mxu1 %v604_v0  ;;  %438 = vmatprep.mubr.f32.mxu0 %v604_v0 }
  0x46   :  { %525 = vmatmul.mubr.msk.f32.gmra.mrb[22].mxu1 %vm81_vm0, %v36_v26  ;;  %533 = vmatmul.mubr.msk.f32.gmra.mrb[22].mxu0 %vm81_vm0, %v36_v26 }
  0xed   :  { %v172_v34 = vpop.f32.mrb[0].mxu0  ;;  %v196_v35 = vpop.f32.mrb[0].mxu1 }
  0xee   :  { %v173_v36 = vadd.f32 %v172_v34, %v54_v32  ;;  %v197_v37 = vadd.f32 %v196_v35, %v54_v32  ;;  %v174_v38 = vpop.f32.mrb[1].mxu0  ;;  %v198_v39 = vpop.f32.mrb[1].mxu1 }
  0xef   :  { %v175_v40 = vadd.f32 %v174_v38, %v58_v33  ;;  %v199_v41 = vadd.f32 %v198_v39, %v58_v33 }
  0xf0   :  { %445 = vst [vmem:[#allocation5] sm:$0xff] %v173_v36  ;;  %469 = vst [vmem:[#allocation5 + $0xc0] sm:$0xff] %v197_v37 }
  0xf1   :  { %446 = vst [vmem:[#allocation5 + $0x8] sm:$0xff] %v175_v40  ;;  %470 = vst [vmem:[#allocation5 + $0xc8] sm:$0xff] %v199_v41  ;;  %v178_v42 = vpop.f32.mrb[2].mxu0  ;;  %v202_v43 = vpop.f32.mrb[2].mxu1 }
  0xf2   :  { %v179_v44 = vadd.f32 %v178_v42, %v54_v32  ;;  %v203_v45 = vadd.f32 %v202_v43, %v54_v32  ;;  %v180_v46 = vpop.f32.mrb[3].mxu0  ;;  %v204_v47 = vpop.f32.mrb[3].mxu1 }
  0xf3   :  { %v181_v48 = vadd.f32 %v180_v46, %v58_v33  ;;  %v205_v49 = vadd.f32 %v204_v47, %v58_v33 }
  0xf4   :  { %451 = vst [vmem:[#allocation5 + $0x30] sm:$0xff] %v179_v44  ;;  %475 = vst [vmem:[#allocation5 + $0xf0] sm:$0xff] %v203_v45 }
  0xf5   :  { %452 = vst [vmem:[#allocation5 + $0x38] sm:$0xff] %v181_v48  ;;  %476 = vst [vmem:[#allocation5 + $0xf8] sm:$0xff] %v205_v49  ;;  %v184_v50 = vpop.f32.mrb[4].mxu0  ;;  %v208_v51 = vpop.f32.mrb[4].mxu1 }
  0xf6   :  { %v185_v52 = vadd.f32 %v184_v50, %v54_v32  ;;  %v209_v53 = vadd.f32 %v208_v51, %v54_v32  ;;  %v186_v54 = vpop.f32.mrb[5].mxu0  ;;  %v210_v55 = vpop.f32.mrb[5].mxu1 }
  0xf7   :  { %v187_v58 = vadd.f32 %v186_v54, %v58_v33  ;;  %v211_v59 = vadd.f32 %v210_v55, %v58_v33 }
  0xf8   :  { %457 = vst [vmem:[#allocation5 + $0x60] sm:$0xff] %v185_v52  ;;  %481 = vst [vmem:[#allocation5 + $0x120] sm:$0xff] %v209_v53 }
  0xf9   :  { %458 = vst [vmem:[#allocation5 + $0x68] sm:$0xff] %v187_v58  ;;  %482 = vst [vmem:[#allocation5 + $0x128] sm:$0xff] %v211_v59  ;;  %v190_v62 = vpop.f32.mrb[6].mxu0  ;;  %v214_v63 = vpop.f32.mrb[6].mxu1 }
  0xfa   :  { %v191_v0 = vadd.f32 %v190_v62, %v54_v32  ;;  %v215_v1 = vadd.f32 %v214_v63, %v54_v32  ;;  %v192_v2 = vpop.f32.mrb[7].mxu0  ;;  %v216_v3 = vpop.f32.mrb[7].mxu1 }
  0xfb   :  { %v193_v6 = vadd.f32 %v192_v2, %v58_v33  ;;  %v217_v7 = vadd.f32 %v216_v3, %v58_v33 }
  0xfc   :  { %463 = vst [vmem:[#allocation5 + $0x90] sm:$0xff] %v191_v0  ;;  %487 = vst [vmem:[#allocation5 + $0x150] sm:$0xff] %v215_v1 }
  0xfd   :  { %464 = vst [vmem:[#allocation5 + $0x98] sm:$0xff] %v193_v6  ;;  %488 = vst [vmem:[#allocation5 + $0x158] sm:$0xff] %v217_v7  ;;  %v285_v10 = vpop.f32.mrb[8].mxu1  ;;  %v398_v11 = vpop.f32.mrb[8].mxu0 }
  0xfe   :  { %v286_v12 = vadd.f32 %v285_v10, %v716_v4  ;;  %v399_v13 = vadd.f32 %v398_v11, %v718_v5  ;;  %v287_v14 = vpop.f32.mrb[9].mxu1  ;;  %v400_v15 = vpop.f32.mrb[9].mxu0 }
  0xff   :  { %v288_v16 = vadd.f32 %v287_v14, %v720_v8  ;;  %v401_v17 = vadd.f32 %v400_v15, %v722_v9 }
 0x100   :  { %447 = vst [vmem:[#allocation5 + $0x10] sm:$0xff] %v286_v12  ;;  %449 = vst [vmem:[#allocation5 + $0x20] sm:$0xff] %v399_v13 }
 0x101   :  { %448 = vst [vmem:[#allocation5 + $0x18] sm:$0xff] %v288_v16  ;;  %450 = vst [vmem:[#allocation5 + $0x28] sm:$0xff] %v401_v17  ;;  %v291_v18 = vpop.f32.mrb[10].mxu1  ;;  %v404_v19 = vpop.f32.mrb[10].mxu0 }
 0x102   :  { %v292_v20 = vadd.f32 %v291_v18, %v716_v4  ;;  %v405_v21 = vadd.f32 %v404_v19, %v718_v5  ;;  %v293_v22 = vpop.f32.mrb[11].mxu1  ;;  %v406_v23 = vpop.f32.mrb[11].mxu0 }
 0x103   :  { %v294_v24 = vadd.f32 %v293_v22, %v720_v8  ;;  %v407_v25 = vadd.f32 %v406_v23, %v722_v9 }
 0x104   :  { %453 = vst [vmem:[#allocation5 + $0x40] sm:$0xff] %v292_v20  ;;  %455 = vst [vmem:[#allocation5 + $0x50] sm:$0xff] %v405_v21 }
 0x105   :  { %454 = vst [vmem:[#allocation5 + $0x48] sm:$0xff] %v294_v24  ;;  %456 = vst [vmem:[#allocation5 + $0x58] sm:$0xff] %v407_v25  ;;  %v297_v26 = vpop.f32.mrb[12].mxu1  ;;  %v410_v27 = vpop.f32.mrb[12].mxu0 }
 0x106   :  { %v298_v28 = vadd.f32 %v297_v26, %v716_v4  ;;  %v411_v29 = vadd.f32 %v410_v27, %v718_v5  ;;  %v299_v30 = vpop.f32.mrb[13].mxu1  ;;  %v412_v31 = vpop.f32.mrb[13].mxu0 }
 0x107   :  { %v300_v32 = vadd.f32 %v299_v30, %v720_v8  ;;  %v413_v33 = vadd.f32 %v412_v31, %v722_v9 }
 0x108   :  { %459 = vst [vmem:[#allocation5 + $0x70] sm:$0xff] %v298_v28  ;;  %461 = vst [vmem:[#allocation5 + $0x80] sm:$0xff] %v411_v29 }
 0x109   :  { %460 = vst [vmem:[#allocation5 + $0x78] sm:$0xff] %v300_v32  ;;  %462 = vst [vmem:[#allocation5 + $0x88] sm:$0xff] %v413_v33  ;;  %v303_v34 = vpop.f32.mrb[14].mxu1  ;;  %v416_v35 = vpop.f32.mrb[14].mxu0 }
 0x10a   :  { %v304_v36 = vadd.f32 %v303_v34, %v716_v4  ;;  %v417_v37 = vadd.f32 %v416_v35, %v718_v5  ;;  %v305_v38 = vpop.f32.mrb[15].mxu1  ;;  %v418_v39 = vpop.f32.mrb[15].mxu0 }
 0x10b   :  { %v306_v40 = vadd.f32 %v305_v38, %v720_v8  ;;  %v419_v41 = vadd.f32 %v418_v39, %v722_v9 }
 0x10c   :  { %465 = vst [vmem:[#allocation5 + $0xa0] sm:$0xff] %v304_v36  ;;  %467 = vst [vmem:[#allocation5 + $0xb0] sm:$0xff] %v417_v37 }
 0x10d   :  { %466 = vst [vmem:[#allocation5 + $0xa8] sm:$0xff] %v306_v40  ;;  %468 = vst [vmem:[#allocation5 + $0xb8] sm:$0xff] %v419_v41  ;;  %v309_v42 = vpop.f32.mrb[16].mxu1  ;;  %v422_v43 = vpop.f32.mrb[16].mxu0 }
 0x10e   :  { %v310_v44 = vadd.f32 %v309_v42, %v716_v4  ;;  %v423_v45 = vadd.f32 %v422_v43, %v718_v5  ;;  %v311_v46 = vpop.f32.mrb[17].mxu1  ;;  %v424_v47 = vpop.f32.mrb[17].mxu0 }
 0x10f   :  { %v312_v48 = vadd.f32 %v311_v46, %v720_v8  ;;  %v425_v49 = vadd.f32 %v424_v47, %v722_v9 }
 0x110   :  { %471 = vst [vmem:[#allocation5 + $0xd0] sm:$0xff] %v310_v44  ;;  %473 = vst [vmem:[#allocation5 + $0xe0] sm:$0xff] %v423_v45 }
 0x111   :  { %472 = vst [vmem:[#allocation5 + $0xd8] sm:$0xff] %v312_v48  ;;  %474 = vst [vmem:[#allocation5 + $0xe8] sm:$0xff] %v425_v49  ;;  %v315_v50 = vpop.f32.mrb[18].mxu1  ;;  %v428_v51 = vpop.f32.mrb[18].mxu0 }
 0x112   :  { %v316_v52 = vadd.f32 %v315_v50, %v716_v4  ;;  %v429_v53 = vadd.f32 %v428_v51, %v718_v5  ;;  %v317_v54 = vpop.f32.mrb[19].mxu1  ;;  %v430_v55 = vpop.f32.mrb[19].mxu0 }
 0x113   :  { %v318_v56 = vadd.f32 %v317_v54, %v720_v8  ;;  %v431_v57 = vadd.f32 %v430_v55, %v722_v9 }
 0x114   :  { %477 = vst [vmem:[#allocation5 + $0x100] sm:$0xff] %v316_v52  ;;  %479 = vst [vmem:[#allocation5 + $0x110] sm:$0xff] %v429_v53 }
 0x115   :  { %478 = vst [vmem:[#allocation5 + $0x108] sm:$0xff] %v318_v56  ;;  %480 = vst [vmem:[#allocation5 + $0x118] sm:$0xff] %v431_v57  ;;  %v321_v58 = vpop.f32.mrb[20].mxu1  ;;  %v434_v59 = vpop.f32.mrb[20].mxu0 }
 0x116   :  { %v322_v60 = vadd.f32 %v321_v58, %v716_v4  ;;  %v435_v61 = vadd.f32 %v434_v59, %v718_v5  ;;  %v323_v62 = vpop.f32.mrb[21].mxu1  ;;  %v436_v63 = vpop.f32.mrb[21].mxu0 }
 0x117   :  { %v324_v0 = vadd.f32 %v323_v62, %v720_v8  ;;  %v437_v1 = vadd.f32 %v436_v63, %v722_v9 }
 0x118   :  { %483 = vst [vmem:[#allocation5 + $0x130] sm:$0xff] %v322_v60  ;;  %485 = vst [vmem:[#allocation5 + $0x140] sm:$0xff] %v435_v61 }
 0x119   :  { %484 = vst [vmem:[#allocation5 + $0x138] sm:$0xff] %v324_v0  ;;  %486 = vst [vmem:[#allocation5 + $0x148] sm:$0xff] %v437_v1  ;;  %v327_v2 = vpop.f32.mrb[22].mxu1  ;;  %v440_v3 = vpop.f32.mrb[22].mxu0 }
 0x11a   :  { %v328_v6 = vadd.f32 %v327_v2, %v716_v4  ;;  %v441_v7 = vadd.f32 %v440_v3, %v718_v5  ;;  %v329_v10 = vpop.f32.mrb[23].mxu1  ;;  %v442_v11 = vpop.f32.mrb[23].mxu0 }
 0x11b   :  { %v330_v12 = vadd.f32 %v329_v10, %v720_v8  ;;  %v443_v13 = vadd.f32 %v442_v11, %v722_v9 }
 0x11c   :  { %489 = vst [vmem:[#allocation5 + $0x160] sm:$0xff] %v328_v6  ;;  %491 = vst [vmem:[#allocation5 + $0x170] sm:$0xff] %v441_v7 }
 0x11d   :  { %490 = vst [vmem:[#allocation5 + $0x168] sm:$0xff] %v330_v12  ;;  %492 = vst [vmem:[#allocation5 + $0x178] sm:$0xff] %v443_v13 }
 0x11e   :  { %586 = shalt.err (!%p583_p12)
}
 0x11f   :  { %s587_s19 = scalar_lea.hbm %s774_s3, 6144 }
 0x120   :  { %p588_p13 = scmp.ne.s32.totalorder %s774_s3, %s587_s19  ;;  %p591_p0 = scmp.lt.u32.totalorder %s587_s19, %s774_s3 }
 0x122   :  { %p593_p1 = pnand %p591_p0, %p588_p13 }
 0x124   :  { %596 = shalt.err (!%p593_p1)
}
 0x125   :  { %504 = dma.vmem_to_hbm [thread:$0]  %s499_s15, 6144, %s774_s3, [#allocation4], %s602_s22, %s602_s22, %s603_s23  }
 0x126   :  { %599 = dma.done.wait [#allocation4], 6144  }
 0x127   :  { %600 = vsyncadd [#allocation4], 4294961152 }
 0x128   :  { %508 = vsyncpa [#allocation3], 1 }
 0x129   :  { %509 = vsyncpa [#allocation4], 1 }

</bundles_post_ra>
